<compile_context>
chip_gen: v7x
topology: tpu7x:2x2x1
jax: 0.10.0
libtpu: 0.0.40
codegen_flags: <defaults>
</compile_context>

<pallas_src>
import math

import numpy as np
import jax
import jax.numpy as jnp
from jax.experimental import pallas as pl
from jax.experimental.pallas import tpu as pltpu


def _round_up(a, b):
    return -(-a // b) * b


def _linear_nobias_kernel(x_ref, w_ref, o_ref):
    # x_ref: (tm, Kp), w_ref: (Kp, Np), o_ref: (tm, Np). MXU matmul, f32 acc.
    o_ref[...] = jnp.dot(
        x_ref[...], w_ref[...], preferred_element_type=jnp.float32
    ).astype(o_ref.dtype)


def _choose_pack_factor(d_inp, d_model, itemsize, max_packed_weight_bytes):
    """Smallest P with (P*d_model) % 128 == 0 (lane-dense output); bump P so
    (P*d_inp) % 128 == 0 too iff the block-diagonal packed weight stays small
    enough to remain VMEM-resident."""
    p_n = 128 // math.gcd(d_model, 128)          # unmasked output stores
    p_k = 128 // math.gcd(d_inp, 128)            # unmasked x loads / K = 128
    p_full = p_n * p_k // math.gcd(p_n, p_k)     # lcm
    if p_full * p_full * d_inp * d_model * itemsize <= max_packed_weight_bytes:
        return p_full
    return p_n


def pack_time_feature_weight(weight, *, max_packed_weight_bytes=2 << 20):
    """Build the block-diagonal packed weight ONCE per weight (module init).

    weight: [d_inp, d_model] (transpose of PyTorch's nn.Linear [d_model, d_inp]).
    Returns (w_packed [P*d_inp, P*d_model], P).
    """
    d_inp, d_model = weight.shape
    P = _choose_pack_factor(d_inp, d_model, weight.dtype.itemsize,
                            max_packed_weight_bytes)
    w_packed = jnp.einsum(
        "pq,kn->pkqn", jnp.eye(P, dtype=weight.dtype), weight
    ).reshape(P * d_inp, P * d_model)
    return w_packed, P


def _choose_tm(M_packed, Kp, Np, x_itemsize, out_itemsize, w_bytes,
               tm_packed=None, vmem_budget_bytes=10 << 20):
    """Pick the packed-row tile size (second-to-last block dim)."""
    if tm_packed is not None:
        tm = max(8, (tm_packed // 8) * 8)
    else:
        # Double-buffered x/out tiles + (double-buffered) resident weight must
        # fit the tightest default scoped VMEM (v5e: 16 MiB); target ~10 MiB.
        Kp_vmem = _round_up(Kp, 128)             # lane padding of the x buffer
        per_row = 2 * (Kp_vmem * x_itemsize + Np * out_itemsize)
        tm = max(16, int((vmem_budget_bytes - 2 * w_bytes) // per_row))
    # Keep >= 2 grid steps (when there is enough work) so the "parallel" M axis
    # can be sharded across v7x's two TensorCores.
    if M_packed > 32:
        tm = min(tm, _round_up(pl.cdiv(M_packed, 2), 16))
    if tm >= M_packed:
        return M_packed                           # single full-extent block
    return max(8, (tm // 8) * 8)                  # sublane-aligned


def time_feature_embedding(x, weight=None, *, packed=None, out_dtype=None,
                           tm_packed=None):
    """TimeFeatureEmbedding forward: out[B, L, d_model] = x @ weight (no bias).

    Pass either `weight` [d_inp, d_model] or a pre-packed `packed=(w_packed, P)`
    from pack_time_feature_weight (preferred: build once at module init).
    """
    if packed is None:
        if weight is None:
            raise ValueError("pass `weight` or `packed=(w_packed, P)`")
        packed = pack_time_feature_weight(weight)
    w_packed, P = packed
    Kp, Np = w_packed.shape
    d_inp = Kp // P
    d_model = Np // P

    B, L, d_inp_x = x.shape
    if d_inp_x != d_inp:
        raise ValueError(f"x last dim {d_inp_x} != packed d_inp {d_inp}")
    if out_dtype is None:
        out_dtype = x.dtype
    out_itemsize = np.dtype(out_dtype).itemsize

    M = B * L
    x2d = x.reshape(M, d_inp)

    # Pad only up to a multiple of P (<= P-1 rows; no-op when M % P == 0).
    # No tile-multiple padding: the grid uses a ragged last block instead and
    # Pallas masks out-of-bounds writes (garbage rows in the last x tile only
    # produce garbage output rows that are never written back).
    M_padP = _round_up(M, P)
    if M_padP != M:
        x2d = jnp.pad(x2d, ((0, M_padP - M), (0, 0)))
    M_packed = M_padP // P
    x_packed = x2d.reshape(M_packed, Kp)          # free: contiguous row-major

    w_bytes = w_packed.size * w_packed.dtype.itemsize
    tm = _choose_tm(M_packed, Kp, Np, x_packed.dtype.itemsize, out_itemsize,
                    w_bytes, tm_packed=tm_packed)
    grid_m = pl.cdiv(M_packed, tm)

    x_bytes = x_packed.size * x_packed.dtype.itemsize
    out_bytes = M_packed * Np * out_itemsize
    cost = pl.CostEstimate(
        flops=2 * M * d_inp * d_model,
        transcendentals=0,
        bytes_accessed=int(x_bytes + w_bytes + out_bytes),
    )

    out_packed = pl.pallas_call(
        _linear_nobias_kernel,
        out_shape=jax.ShapeDtypeStruct((M_packed, Np), out_dtype),
        grid_spec=pltpu.PrefetchScalarGridSpec(
            num_scalar_prefetch=0,
            grid=(grid_m,),
            in_specs=[
                # x tiles stream over M (double-buffered by the pipeline).
                pl.BlockSpec((tm, Kp), lambda i: (i, 0)),
                # packed weight: constant index_map -> VMEM-resident.
                pl.BlockSpec((Kp, Np), lambda i: (0, 0)),
            ],
            out_specs=pl.BlockSpec((tm, Np), lambda i: (i, 0)),
        ),
        compiler_params=pltpu.CompilerParams(
            # M axis is embarrassingly parallel -> megacore sharding on v7x.
            dimension_semantics=("parallel",),
        ),
        cost_estimate=cost,
    )(x_packed, w_packed)

    out2d = out_packed.reshape(M_padP, d_model)   # free reshape (contiguous)
    if M_padP != M:
        out2d = out2d[:M]                          # only when M % P != 0
    return out2d.reshape(B, L, d_model)


if __name__ == "__main__":
    # Module config: freq='h' -> d_inp = 4; small d_model for the demo.
    d_inp = 4        # freq_map['h']
    d_model = 32
    B, L = 2, 8

    key = jax.random.PRNGKey(0)
    kx, kw, kx2 = jax.random.split(key, 3)

    x = jax.random.normal(kx, (B, L, d_inp), dtype=jnp.float32)

    # Mimic nn.Linear default init: uniform(-1/sqrt(fan_in), 1/sqrt(fan_in)).
    bound = 1.0 / math.sqrt(d_inp)
    weight = jax.random.uniform(
        kw, (d_inp, d_model), dtype=jnp.float32, minval=-bound, maxval=bound
    )

    # Build the packed weight once ("module init"), reuse across calls.
    packed = pack_time_feature_weight(weight)

    # 1) Small shape from the module spec (exercises the ragged M % P != 0 path).
    out = jax.block_until_ready(time_feature_embedding(x, packed=packed))
    ref = jnp.einsum("bli,io->blo", x, weight)
    assert out.shape == (B, L, d_model)
    assert jnp.allclose(out, ref, atol=1e-5, rtol=1e-5)

    # 2) Larger shape: zero-copy (M % P == 0) path with a multi-step ragged-free grid.
    B2, L2 = 4, 256
    x2 = jax.random.normal(kx2, (B2, L2, d_inp), dtype=jnp.float32)
    out2 = jax.block_until_ready(
        time_feature_embedding(x2, packed=packed, tm_packed=8))
    ref2 = jnp.einsum("bli,io->blo", x2, weight)
    assert jnp.allclose(out2, ref2, atol=1e-5, rtol=1e-5)

    # 3) bf16 output path (halves the dominant writeback stream); looser tolerance.
    out_bf16 = jax.block_until_ready(
        time_feature_embedding(x2, packed=packed, out_dtype=jnp.bfloat16))
    assert jnp.allclose(out_bf16.astype(jnp.float32), ref2, atol=2e-2, rtol=2e-2)

    print("KERNEL_OK")
</pallas_src>

<mosaic_0001>
module attributes {stable_mosaic.version = 11 : i64} {
  func.func @_linear_nobias_kernel(%arg0: i32, %arg1: memref<1x128xf32, #tpu.memory_space<vmem>>, %arg2: memref<128x1024xf32, #tpu.memory_space<vmem>>, %arg3: memref<1x1024xf32, #tpu.memory_space<vmem>>) attributes {dimension_semantics = [#tpu.dimension_semantics<parallel>], iteration_bounds = array<i64: 1>, scalar_prefetch = 0 : i64, scratch_operands = 0 : i64, tpu.core_type = #tpu.core_type<tc>, window_params = [{transform_indices = @transform_0, window_bounds = array<i64: 1, 128>}, {pipeline_mode = #tpu.pipeline_mode<synchronous>, transform_indices = @transform_1, window_bounds = array<i64: 128, 1024>}, {transform_indices = @transform_2, window_bounds = array<i64: 1, 1024>}]} {
    %c0 = arith.constant 0 : index
    %c0_0 = arith.constant 0 : index
    %0 = vector.load %arg1[%c0, %c0_0] : memref<1x128xf32, #tpu.memory_space<vmem>>, vector<1x128xf32>
    %c0_1 = arith.constant 0 : index
    %c0_2 = arith.constant 0 : index
    %1 = vector.load %arg2[%c0_1, %c0_2] : memref<128x1024xf32, #tpu.memory_space<vmem>>, vector<128x1024xf32>
    %cst = arith.constant dense<0.000000e+00> : vector<1x1024xf32>
    %2 = tpu.matmul %0, %1, %cst {dimension_numbers = #tpu.dot_dimension_numbers<[1], [0], [0], [1], [0, 0, 1, 1], [], []>} : vector<1x128xf32>, vector<128x1024xf32>, vector<1x1024xf32> -> vector<1x1024xf32>
    %c0_3 = arith.constant 0 : index
    %c0_4 = arith.constant 0 : index
    %3 = vector.load %arg3[%c0_3, %c0_4] : memref<1x1024xf32, #tpu.memory_space<vmem>>, vector<1x1024xf32>
    tpu.vector_store %arg3[%c0_3, %c0_4], %2 {strides = array<i32>} : memref<1x1024xf32, #tpu.memory_space<vmem>>, vector<1x1024xf32>,
    return
  }
  func.func @transform_0(%arg0: i32) -> (i32, i32) {
    %c0_i32 = arith.constant 0 : i32
    %c0_i32_0 = arith.constant 0 : i32
    return %arg0, %c0_i32 : i32, i32
  }
  func.func @transform_1(%arg0: i32) -> (i32, i32) {
    %c0_i32 = arith.constant 0 : i32
    %c0_i32_0 = arith.constant 0 : i32
    %c0_i32_1 = arith.constant 0 : i32
    return %c0_i32, %c0_i32_0 : i32, i32
  }
  func.func @transform_2(%arg0: i32) -> (i32, i32) {
    %c0_i32 = arith.constant 0 : i32
    %c0_i32_0 = arith.constant 0 : i32
    return %arg0, %c0_i32 : i32, i32
  }
}

</mosaic_0001>

<bundles_post_ra>
// kernel: tpu_custom_call.1
= control target key start
LH: loop header
LB: loop body
LE: loop exit
PB: predicated region body
PF: predicated region fallthrough
CT: control target
= control target key end

     0   :  { %7 = vsyncpa [#allocation3], 0  ;;  %s808_s0 = inlined_call_operand.hbm [shape: f32[1,128], index: 0, kind: input, shape index: {}]   ;;  %s809_s1 = inlined_call_operand.hbm [shape: f32[128,1024], index: 1, kind: input, shape index: {}]   ;;  %s810_s2 = inlined_call_operand.hbm [shape: f32[1,1024], index: 2, kind: output, shape index: {}]  }
   0x1   :  { %8 = vsyncpa [#allocation6], 0 }
   0x2   :  { %9 = vsyncpa [#allocation4], 0  ;;  %s733_s9 = smov [#allocation2]   ;;  %s734_s11 = smov [#allocation5]  }
   0x3   :  { %s16_s10 = sshll.u32 %s733_s9, 4  ;;  %s25_s12 = sshll.u32 %s734_s11, 4  ;;  %s17_s10 = int_to_ptr.vmem [resolvable:$true] %s16_s10  ;;  %s755_s12 = int_to_ptr.vmem [resolvable:$true] %s25_s12 }
   0x4   :  { %s661_s15 = scalar_lea.hbm %s808_s0, 16 }
   0x5   :  { %p662_p0 = scmp.ne.s32.totalorder %s808_s0, %s661_s15  ;;  %p665_p1 = scmp.lt.u32.totalorder %s661_s15, %s808_s0 }
   0x7   :  { %p667_p2 = pnand %p665_p1, %p662_p0 }
   0x9   :  { %670 = shalt.err (!%p667_p2)
}
   0xa   :  { %s671_s20 = scalar_lea.vmem %s17_s10, 16  ;;  %s675_s21 = scalar_lea.vmem %s17_s10, 32 }
   0xb   :  { %p672_p3 = scmp.ne.s32.totalorder %s17_s10, %s671_s20  ;;  %p676_p4 = scmp.lt.s32.totalorder %s17_s10, %s17_s10 }
   0xc   :  { %p677_p5 = scmp.lt.s32.totalorder %s675_s21, %s671_s20 }
   0xe   :  { %p678_p6 = por %p677_p5, %p676_p4 }
  0x10   :  { %p679_p7 = pnand %p678_p6, %p672_p3 }
  0x12   :  { %682 = shalt.err (!%p679_p7)
}
  0x13   :  { %19 = dma.hbm_to_vmem [thread:$0]  %s808_s0, 16, %s17_s10, [#allocation3]  }
  0x14   :  { %s683_s26 = scalar_lea.hbm %s809_s1, 16384 }
  0x15   :  { %p684_p8 = scmp.ne.s32.totalorder %s809_s1, %s683_s26  ;;  %p687_p9 = scmp.lt.u32.totalorder %s683_s26, %s809_s1 }
  0x17   :  { %p689_p10 = pnand %p687_p9, %p684_p8 }
  0x19   :  { %692 = shalt.err (!%p689_p10)
}
  0x1a   :  { %s693_s3 = scalar_lea.vmem %s755_s12, 16384  ;;  %p698_p12 = scmp.lt.s32.totalorder %s755_s12, %s755_s12 }
  0x1b   :  { %p694_p11 = scmp.ne.s32.totalorder %s755_s12, %s693_s3  ;;  %p699_p13 = scmp.lt.s32.totalorder %s693_s3, %s693_s3 }
  0x1d   :  { %p700_p0 = por %p699_p13, %p698_p12 }
  0x1f   :  { %p701_p1 = pnand %p700_p0, %p694_p11 }
  0x21   :  { %704 = shalt.err (!%p701_p1)
}
  0x22   :  { %s735_s0 = smov 1024   ;;  %s736_s4 = smov 64  }
  0x23   :  { %31 = dma.hbm_to_vmem [thread:$0]  %s809_s1, 16384, %s755_s12, [#allocation6], %s735_s0, %s735_s0, %s736_s4  }
  0x24   :  { %727 = dma.done.wait [#allocation3], 16  }
  0x25   :  { %728 = vsyncadd [#allocation3], 4294967280 }
  0x26   :  { %729 = dma.done.wait [#allocation6], 16384  }
  0x27   :  { %730 = vsyncadd [#allocation6], 4294950912  ;;  %v737_v0 = vmov 0.0   ;;  %v40_v1 = vld [vmem:[#allocation5 + $0x8] sm:$0xff]  ;;  %v42_v3 = vld [vmem:[#allocation5 + $0x18] sm:$0xff]  ;;  %s739_s1 = smov [#allocation7]  }
  0x28   :  { %231 = vmatprep.mubr.f32.mxu0 %v737_v0  ;;  %302 = vmatprep.mubr.f32.mxu1 %v737_v0  ;;  %v48_v2 = vld [vmem:[#allocation5 + $0x48] sm:$0xff]  ;;  %v50_v5 = vld [vmem:[#allocation5 + $0x58] sm:$0xff]  ;;  %v39_v6 = vld [vmem:[#allocation5] sm:$0xff]  ;;  %s516_s7 = sshll.u32 %s739_s1, 4  ;;  %s517_s7 = int_to_ptr.vmem [resolvable:$true] %s516_s7 }
  0x29   :  { %v526_v4 = vpack.c.bf16 %v48_v2, %v40_v1  ;;  %v47_v7 = vld [vmem:[#allocation5 + $0x40] sm:$0xff]  ;;  %v558_v8 = vpack.c.bf16 %v50_v5, %v42_v3  ;;  %v41_v10 = vld [vmem:[#allocation5 + $0x10] sm:$0xff]  ;;  %v56_v12 = vld [vmem:[#allocation5 + $0x88] sm:$0xff]  ;;  %s705_s8 = scalar_lea.vmem %s517_s7, 128  ;;  %p710_p3 = scmp.lt.s32.totalorder %s517_s7, %s517_s7 }
  0x2a   :  { %v528_v9 = vpack.c.bf16 %v47_v7, %v39_v6  ;;  %v49_v11 = vld [vmem:[#allocation5 + $0x50] sm:$0xff]  ;;  %v64_v14 = vld [vmem:[#allocation5 + $0xc8] sm:$0xff]  ;;  %v58_v15 = vld [vmem:[#allocation5 + $0x98] sm:$0xff]  ;;  %p706_p2 = scmp.ne.s32.totalorder %s517_s7, %s705_s8  ;;  %p711_p4 = scmp.lt.s32.totalorder %s705_s8, %s705_s8 }
  0x2b   :  { %527 = vmatprep.subr.bf16.mxu0 %v526_v4  ;;  %v560_v13 = vpack.c.bf16 %v49_v11, %v41_v10  ;;  %v66_v16 = vld [vmem:[#allocation5 + $0xd8] sm:$0xff]  ;;  %559 = vmatprep.subr.bf16.mxu1 %v558_v8  ;;  %v530_v17 = vpack.c.bf16 %v64_v14, %v56_v12  ;;  %v55_v19 = vld [vmem:[#allocation5 + $0x80] sm:$0xff]  ;;  %v57_v21 = vld [vmem:[#allocation5 + $0x90] sm:$0xff] }
  0x2c   :  { %529 = vmatpush1.bf16.msra.mxu0 %v528_v9  ;;  %v562_v18 = vpack.c.bf16 %v66_v16, %v58_v15  ;;  %v63_v20 = vld [vmem:[#allocation5 + $0xc0] sm:$0xff]  ;;  %v65_v23 = vld [vmem:[#allocation5 + $0xd0] sm:$0xff]  ;;  %v72_v24 = vld [vmem:[#allocation5 + $0x108] sm:$0xff]  ;;  %p712_p5 = por %p711_p4, %p710_p3 }
  0x2d   :  { %561 = vmatpush1.bf16.msra.mxu1 %v560_v13  ;;  %v532_v22 = vpack.c.bf16 %v63_v20, %v55_v19  ;;  %v80_v25 = vld [vmem:[#allocation5 + $0x148] sm:$0xff]  ;;  %531 = vmatprep.subr.bf16.mxu0 %v530_v17  ;;  %v564_v26 = vpack.c.bf16 %v65_v23, %v57_v21  ;;  %v74_v28 = vld [vmem:[#allocation5 + $0x118] sm:$0xff]  ;;  %v71_v30 = vld [vmem:[#allocation5 + $0x100] sm:$0xff] }
  0x2e   :  { %563 = vmatprep.subr.bf16.mxu1 %v562_v18  ;;  %v534_v27 = vpack.c.bf16 %v80_v25, %v72_v24  ;;  %v82_v29 = vld [vmem:[#allocation5 + $0x158] sm:$0xff]  ;;  %v79_v32 = vld [vmem:[#allocation5 + $0x140] sm:$0xff]  ;;  %v73_v33 = vld [vmem:[#allocation5 + $0x110] sm:$0xff]  ;;  %p713_p6 = pnand %p712_p5, %p706_p2 }
  0x2f   :  { %v566_v31 = vpack.c.bf16 %v82_v29, %v74_v28  ;;  %v81_v34 = vld [vmem:[#allocation5 + $0x150] sm:$0xff]  ;;  %v536_v35 = vpack.c.bf16 %v79_v32, %v71_v30  ;;  %v88_v36 = vld [vmem:[#allocation5 + $0x188] sm:$0xff]  ;;  %v90_v38 = vld [vmem:[#allocation5 + $0x198] sm:$0xff] }
  0x30   :  { %533 = vmatpush1.bf16.msra.mxu0 %v532_v22  ;;  %v96_v37 = vld [vmem:[#allocation5 + $0x1c8] sm:$0xff]  ;;  %v568_v39 = vpack.c.bf16 %v81_v34, %v73_v33  ;;  %v98_v41 = vld [vmem:[#allocation5 + $0x1d8] sm:$0xff]  ;;  %v87_v42 = vld [vmem:[#allocation5 + $0x180] sm:$0xff] }
  0x31   :  { %565 = vmatpush1.bf16.msra.mxu1 %v564_v26  ;;  %535 = vmatprep.subr.bf16.mxu0 %v534_v27  ;;  %v538_v40 = vpack.c.bf16 %v96_v37, %v88_v36  ;;  %v95_v43 = vld [vmem:[#allocation5 + $0x1c0] sm:$0xff]  ;;  %v570_v44 = vpack.c.bf16 %v98_v41, %v90_v38  ;;  %v89_v45 = vld [vmem:[#allocation5 + $0x190] sm:$0xff]  ;;  %v104_v47 = vld [vmem:[#allocation5 + $0x208] sm:$0xff] }
  0x32   :  { %567 = vmatprep.subr.bf16.mxu1 %v566_v31  ;;  %v97_v46 = vld [vmem:[#allocation5 + $0x1d0] sm:$0xff]  ;;  %v112_v48 = vld [vmem:[#allocation5 + $0x248] sm:$0xff]  ;;  %v106_v49 = vld [vmem:[#allocation5 + $0x218] sm:$0xff]  ;;  %v540_v51 = vpack.c.bf16 %v95_v43, %v87_v42 }
  0x33   :  { %v114_v50 = vld [vmem:[#allocation5 + $0x258] sm:$0xff]  ;;  %v572_v52 = vpack.c.bf16 %v97_v46, %v89_v45  ;;  %v542_v53 = vpack.c.bf16 %v112_v48, %v104_v47  ;;  %v103_v54 = vld [vmem:[#allocation5 + $0x200] sm:$0xff]  ;;  %v105_v56 = vld [vmem:[#allocation5 + $0x210] sm:$0xff] }
  0x34   :  { %537 = vmatpush1.bf16.msra.mxu0 %v536_v35  ;;  %v111_v55 = vld [vmem:[#allocation5 + $0x240] sm:$0xff]  ;;  %v574_v57 = vpack.c.bf16 %v114_v50, %v106_v49  ;;  %v113_v58 = vld [vmem:[#allocation5 + $0x250] sm:$0xff]  ;;  %v120_v59 = vld [vmem:[#allocation5 + $0x288] sm:$0xff] }
  0x35   :  { %569 = vmatpush1.bf16.msra.mxu1 %v568_v39  ;;  %539 = vmatprep.subr.bf16.mxu0 %v538_v40  ;;  %v128_v60 = vld [vmem:[#allocation5 + $0x2c8] sm:$0xff]  ;;  %v122_v61 = vld [vmem:[#allocation5 + $0x298] sm:$0xff]  ;;  %v544_v63 = vpack.c.bf16 %v111_v55, %v103_v54  ;;  %v576_v1 = vpack.c.bf16 %v113_v58, %v105_v56  ;;  %v119_v3 = vld [vmem:[#allocation5 + $0x280] sm:$0xff] }
  0x36   :  { %571 = vmatprep.subr.bf16.mxu1 %v570_v44  ;;  %v130_v62 = vld [vmem:[#allocation5 + $0x2d8] sm:$0xff]  ;;  %v546_v2 = vpack.c.bf16 %v128_v60, %v120_v59  ;;  %v127_v4 = vld [vmem:[#allocation5 + $0x2c0] sm:$0xff]  ;;  %v121_v5 = vld [vmem:[#allocation5 + $0x290] sm:$0xff] }
  0x37   :  { %v578_v6 = vpack.c.bf16 %v130_v62, %v122_v61  ;;  %v129_v7 = vld [vmem:[#allocation5 + $0x2d0] sm:$0xff]  ;;  %v136_v8 = vld [vmem:[#allocation5 + $0x308] sm:$0xff]  ;;  %v138_v10 = vld [vmem:[#allocation5 + $0x318] sm:$0xff]  ;;  %v548_v12 = vpack.c.bf16 %v127_v4, %v119_v3 }
  0x38   :  { %541 = vmatpush1.bf16.msra.mxu0 %v540_v51  ;;  %v144_v9 = vld [vmem:[#allocation5 + $0x348] sm:$0xff]  ;;  %v146_v11 = vld [vmem:[#allocation5 + $0x358] sm:$0xff]  ;;  %v580_v13 = vpack.c.bf16 %v129_v7, %v121_v5  ;;  %v135_v15 = vld [vmem:[#allocation5 + $0x300] sm:$0xff] }
  0x39   :  { %573 = vmatpush1.bf16.msra.mxu1 %v572_v52  ;;  %543 = vmatprep.subr.bf16.mxu0 %v542_v53  ;;  %v550_v14 = vpack.c.bf16 %v144_v9, %v136_v8  ;;  %v143_v16 = vld [vmem:[#allocation5 + $0x340] sm:$0xff]  ;;  %v137_v17 = vld [vmem:[#allocation5 + $0x310] sm:$0xff]  ;;  %v582_v18 = vpack.c.bf16 %v146_v11, %v138_v10  ;;  %v152_v20 = vld [vmem:[#allocation5 + $0x388] sm:$0xff] }
  0x3a   :  { %575 = vmatprep.subr.bf16.mxu1 %v574_v57  ;;  %v145_v19 = vld [vmem:[#allocation5 + $0x350] sm:$0xff]  ;;  %v160_v21 = vld [vmem:[#allocation5 + $0x3c8] sm:$0xff]  ;;  %v154_v22 = vld [vmem:[#allocation5 + $0x398] sm:$0xff]  ;;  %v552_v24 = vpack.c.bf16 %v143_v16, %v135_v15 }
  0x3b   :  { %v162_v23 = vld [vmem:[#allocation5 + $0x3d8] sm:$0xff]  ;;  %v584_v25 = vpack.c.bf16 %v145_v19, %v137_v17  ;;  %v554_v26 = vpack.c.bf16 %v160_v21, %v152_v20  ;;  %v151_v27 = vld [vmem:[#allocation5 + $0x380] sm:$0xff]  ;;  %v153_v29 = vld [vmem:[#allocation5 + $0x390] sm:$0xff] }
  0x3c   :  { %545 = vmatpush1.bf16.msra.mxu0 %v544_v63  ;;  %v159_v28 = vld [vmem:[#allocation5 + $0x3c0] sm:$0xff]  ;;  %v586_v30 = vpack.c.bf16 %v162_v23, %v154_v22  ;;  %v161_v31 = vld [vmem:[#allocation5 + $0x3d0] sm:$0xff]  ;;  %v44_v32 = vld [vmem:[#allocation5 + $0x28] sm:$0xff] }
  0x3d   :  { %577 = vmatpush1.bf16.msra.mxu1 %v576_v1  ;;  %547 = vmatprep.subr.bf16.mxu0 %v546_v2  ;;  %v52_v33 = vld [vmem:[#allocation5 + $0x68] sm:$0xff]  ;;  %v46_v34 = vld [vmem:[#allocation5 + $0x38] sm:$0xff]  ;;  %v556_v36 = vpack.c.bf16 %v159_v28, %v151_v27  ;;  %v588_v37 = vpack.c.bf16 %v161_v31, %v153_v29  ;;  %v43_v39 = vld [vmem:[#allocation5 + $0x20] sm:$0xff] }
  0x3e   :  { %579 = vmatprep.subr.bf16.mxu1 %v578_v6  ;;  %v54_v35 = vld [vmem:[#allocation5 + $0x78] sm:$0xff]  ;;  %v590_v38 = vpack.c.bf16 %v52_v33, %v44_v32  ;;  %v51_v40 = vld [vmem:[#allocation5 + $0x60] sm:$0xff]  ;;  %v45_v41 = vld [vmem:[#allocation5 + $0x30] sm:$0xff] }
  0x3f   :  { %v622_v42 = vpack.c.bf16 %v54_v35, %v46_v34  ;;  %v53_v43 = vld [vmem:[#allocation5 + $0x70] sm:$0xff]  ;;  %v60_v44 = vld [vmem:[#allocation5 + $0xa8] sm:$0xff]  ;;  %v62_v46 = vld [vmem:[#allocation5 + $0xb8] sm:$0xff]  ;;  %v592_v49 = vpack.c.bf16 %v51_v40, %v43_v39 }
  0x40   :  { %549 = vmatpush1.bf16.msra.mxu0 %v548_v12  ;;  %v68_v45 = vld [vmem:[#allocation5 + $0xe8] sm:$0xff]  ;;  %v70_v47 = vld [vmem:[#allocation5 + $0xf8] sm:$0xff]  ;;  %v624_v50 = vpack.c.bf16 %v53_v43, %v45_v41  ;;  %v59_v52 = vld [vmem:[#allocation5 + $0xa0] sm:$0xff] }
  0x41   :  { %581 = vmatpush1.bf16.msra.mxu1 %v580_v13  ;;  %551 = vmatprep.subr.bf16.mxu0 %v550_v14  ;;  %v788_v48 = vld [vmem:[#allocation2] sm:$0x1]  ;;  %v594_v51 = vpack.c.bf16 %v68_v45, %v60_v44  ;;  %v67_v53 = vld [vmem:[#allocation5 + $0xe0] sm:$0xff]  ;;  %v61_v54 = vld [vmem:[#allocation5 + $0xb0] sm:$0xff]  ;;  %v626_v55 = vpack.c.bf16 %v70_v47, %v62_v46 }
  0x42   :  { %583 = vmatprep.subr.bf16.mxu1 %v582_v18  ;;  %v69_v56 = vld [vmem:[#allocation5 + $0xf0] sm:$0xff]  ;;  %v76_v57 = vld [vmem:[#allocation5 + $0x128] sm:$0xff]  ;;  %v78_v59 = vld [vmem:[#allocation5 + $0x138] sm:$0xff]  ;;  %v596_v61 = vpack.c.bf16 %v67_v53, %v59_v52 }
  0x43   :  { %v84_v58 = vld [vmem:[#allocation5 + $0x168] sm:$0xff]  ;;  %v86_v60 = vld [vmem:[#allocation5 + $0x178] sm:$0xff]  ;;  %v628_v62 = vpack.c.bf16 %v69_v56, %v61_v54  ;;  %v75_v1 = vld [vmem:[#allocation5 + $0x120] sm:$0xff] }
  0x44   :  { %553 = vmatpush1.bf16.msra.mxu0 %v552_v24  ;;  %v598_v63 = vpack.c.bf16 %v84_v58, %v76_v57  ;;  %v83_v2 = vld [vmem:[#allocation5 + $0x160] sm:$0xff]  ;;  %v77_v3 = vld [vmem:[#allocation5 + $0x130] sm:$0xff]  ;;  %v630_v4 = vpack.c.bf16 %v86_v60, %v78_v59  ;;  %v92_v6 = vld [vmem:[#allocation5 + $0x1a8] sm:$0xff] }
  0x45   :  { %585 = vmatpush1.bf16.msra.mxu1 %v584_v25  ;;  %555 = vmatprep.subr.bf16.mxu0 %v554_v26  ;;  %v85_v5 = vld [vmem:[#allocation5 + $0x170] sm:$0xff]  ;;  %v100_v7 = vld [vmem:[#allocation5 + $0x1e8] sm:$0xff]  ;;  %v94_v8 = vld [vmem:[#allocation5 + $0x1b8] sm:$0xff]  ;;  %v600_v10 = vpack.c.bf16 %v83_v2, %v75_v1 }
  0x46   :  { %587 = vmatprep.subr.bf16.mxu1 %v586_v30  ;;  %v102_v9 = vld [vmem:[#allocation5 + $0x1f8] sm:$0xff]  ;;  %v632_v11 = vpack.c.bf16 %v85_v5, %v77_v3  ;;  %v602_v12 = vpack.c.bf16 %v100_v7, %v92_v6  ;;  %v91_v13 = vld [vmem:[#allocation5 + $0x1a0] sm:$0xff]  ;;  %v93_v15 = vld [vmem:[#allocation5 + $0x1b0] sm:$0xff]  ;;  %v738_v5 = vmov 1966171168   ;;  %v466_v7 = vlaneseq }
  0x47   :  { %v99_v14 = vld [vmem:[#allocation5 + $0x1e0] sm:$0xff]  ;;  %v634_v16 = vpack.c.bf16 %v102_v9, %v94_v8  ;;  %v101_v17 = vld [vmem:[#allocation5 + $0x1f0] sm:$0xff]  ;;  %v108_v18 = vld [vmem:[#allocation5 + $0x228] sm:$0xff]  ;;  %v464_v6 = vunpack.c.l.s4 %v738_v5 }
  0x48   :  { %557 = vmatpush1.bf16.msra.mxu0 %v556_v36  ;;  %v116_v19 = vld [vmem:[#allocation5 + $0x268] sm:$0xff]  ;;  %v110_v20 = vld [vmem:[#allocation5 + $0x238] sm:$0xff]  ;;  %v604_v22 = vpack.c.bf16 %v99_v14, %v91_v13  ;;  %v107_v24 = vld [vmem:[#allocation5 + $0x220] sm:$0xff]  ;;  %v467_v9 = vshrl.u32 %v466_v7, 7 }
  0x49   :  { %589 = vmatpush1.bf16.msra.mxu1 %v588_v37  ;;  %591 = vmatprep.subr.bf16.mxu0 %v590_v38  ;;  %v118_v21 = vld [vmem:[#allocation5 + $0x278] sm:$0xff]  ;;  %v606_v23 = vpack.c.bf16 %v116_v19, %v108_v18  ;;  %v115_v25 = vld [vmem:[#allocation5 + $0x260] sm:$0xff]  ;;  %v109_v26 = vld [vmem:[#allocation5 + $0x230] sm:$0xff]  ;;  %v465_v8 = vunpack.c.0.s8 %v464_v6 }
  0x4a   :  { %623 = vmatprep.subr.bf16.mxu1 %v622_v42  ;;  %v638_v27 = vpack.c.bf16 %v118_v21, %v110_v20  ;;  %v117_v28 = vld [vmem:[#allocation5 + $0x270] sm:$0xff]  ;;  %v124_v29 = vld [vmem:[#allocation5 + $0x2a8] sm:$0xff]  ;;  %v126_v31 = vld [vmem:[#allocation5 + $0x2b8] sm:$0xff]  ;;  %v608_v33 = vpack.c.bf16 %v115_v25, %v107_v24 }
  0x4b   :  { %232 = vmatmul.mubr.f32.vlgmr.msra.gmra.mrb[0].mxu0 %v788_v48  ;;  %v132_v30 = vld [vmem:[#allocation5 + $0x2e8] sm:$0xff]  ;;  %v134_v32 = vld [vmem:[#allocation5 + $0x2f8] sm:$0xff]  ;;  %v640_v34 = vpack.c.bf16 %v117_v28, %v109_v26  ;;  %v123_v36 = vld [vmem:[#allocation5 + $0x2a0] sm:$0xff] }
  0x4c   :  { %303 = vmatmul.mubr.f32.vlgmr.msra.gmra.mrb[0].mxu1 %v788_v48  ;;  %593 = vmatpush1.bf16.msra.mxu0 %v592_v49  ;;  %v610_v35 = vpack.c.bf16 %v132_v30, %v124_v29  ;;  %v131_v37 = vld [vmem:[#allocation5 + $0x2e0] sm:$0xff]  ;;  %v125_v38 = vld [vmem:[#allocation5 + $0x2b0] sm:$0xff]  ;;  %v642_v39 = vpack.c.bf16 %v134_v32, %v126_v31  ;;  %v140_v41 = vld [vmem:[#allocation5 + $0x328] sm:$0xff] }
  0x4d   :  { %625 = vmatpush1.bf16.msra.mxu1 %v624_v50  ;;  %595 = vmatprep.subr.bf16.mxu0 %v594_v51  ;;  %v133_v40 = vld [vmem:[#allocation5 + $0x2f0] sm:$0xff]  ;;  %v148_v42 = vld [vmem:[#allocation5 + $0x368] sm:$0xff]  ;;  %v142_v43 = vld [vmem:[#allocation5 + $0x338] sm:$0xff]  ;;  %v612_v45 = vpack.c.bf16 %v131_v37, %v123_v36 }
  0x4e   :  { %627 = vmatprep.subr.bf16.mxu1 %v626_v55  ;;  %373 = vmatprep.mubr.f32.mxu0 %v737_v0  ;;  %v150_v44 = vld [vmem:[#allocation5 + $0x378] sm:$0xff]  ;;  %v644_v46 = vpack.c.bf16 %v133_v40, %v125_v38  ;;  %v614_v47 = vpack.c.bf16 %v148_v42, %v140_v41  ;;  %v139_v49 = vld [vmem:[#allocation5 + $0x320] sm:$0xff]  ;;  %v141_v51 = vld [vmem:[#allocation5 + $0x330] sm:$0xff] }
  0x4f   :  { %444 = vmatprep.mubr.f32.mxu1 %v737_v0  ;;  %v636_v0 = vpack.c.bf16 %v101_v17, %v93_v15  ;;  %v147_v50 = vld [vmem:[#allocation5 + $0x360] sm:$0xff]  ;;  %v646_v52 = vpack.c.bf16 %v150_v44, %v142_v43  ;;  %v149_v53 = vld [vmem:[#allocation5 + $0x370] sm:$0xff]  ;;  %v156_v54 = vld [vmem:[#allocation5 + $0x3a8] sm:$0xff] }
  0x50   :  { %597 = vmatpush1.bf16.msra.mxu0 %v596_v61  ;;  %v164_v55 = vld [vmem:[#allocation5 + $0x3e8] sm:$0xff]  ;;  %v158_v56 = vld [vmem:[#allocation5 + $0x3b8] sm:$0xff]  ;;  %v616_v58 = vpack.c.bf16 %v147_v50, %v139_v49  ;;  %v648_v59 = vpack.c.bf16 %v149_v53, %v141_v51  ;;  %v155_v61 = vld [vmem:[#allocation5 + $0x3a0] sm:$0xff] }
  0x51   :  { %629 = vmatpush1.bf16.msra.mxu1 %v628_v62  ;;  %599 = vmatprep.subr.bf16.mxu0 %v598_v63  ;;  %v166_v57 = vld [vmem:[#allocation5 + $0x3f8] sm:$0xff]  ;;  %v618_v60 = vpack.c.bf16 %v164_v55, %v156_v54  ;;  %v163_v62 = vld [vmem:[#allocation5 + $0x3e0] sm:$0xff]  ;;  %v157_v1 = vld [vmem:[#allocation5 + $0x3b0] sm:$0xff] }
  0x52   :  { %631 = vmatprep.subr.bf16.mxu1 %v630_v4  ;;  %v650_v63 = vpack.c.bf16 %v166_v57, %v158_v56  ;;  %v165_v2 = vld [vmem:[#allocation5 + $0x3f0] sm:$0xff]  ;;  %v620_v3 = vpack.c.bf16 %v163_v62, %v155_v61 }
  0x53   :  { %v652_v4 = vpack.c.bf16 %v165_v2, %v157_v1 }
  0x54   :  { %601 = vmatpush1.bf16.msra.mxu0 %v600_v10 }
  0x55   :  { %633 = vmatpush1.bf16.msra.mxu1 %v632_v11  ;;  %603 = vmatprep.subr.bf16.mxu0 %v602_v12  ;;  %v468_v11 = vsub.s32 %v465_v8, %v467_v9 }
  0x56   :  { %635 = vmatprep.subr.bf16.mxu1 %v634_v16 }
  0x58   :  { %605 = vmatpush1.bf16.msra.mxu0 %v604_v22 }
  0x59   :  { %637 = vmatpush1.bf16.msra.mxu1 %v636_v0  ;;  %607 = vmatprep.subr.bf16.mxu0 %v606_v23 }
  0x5a   :  { %639 = vmatprep.subr.bf16.mxu1 %v638_v27 }
  0x5c   :  { %609 = vmatpush1.bf16.msra.mxu0 %v608_v33 }
  0x5d   :  { %641 = vmatpush1.bf16.msra.mxu1 %v640_v34  ;;  %611 = vmatprep.subr.bf16.mxu0 %v610_v35 }
  0x5e   :  { %643 = vmatprep.subr.bf16.mxu1 %v642_v39 }
  0x60   :  { %613 = vmatpush1.bf16.msra.mxu0 %v612_v45 }
  0x61   :  { %645 = vmatpush1.bf16.msra.mxu1 %v644_v46  ;;  %615 = vmatprep.subr.bf16.mxu0 %v614_v47 }
  0x62   :  { %647 = vmatprep.subr.bf16.mxu1 %v646_v52 }
  0x64   :  { %617 = vmatpush1.bf16.msra.mxu0 %v616_v58 }
  0x65   :  { %649 = vmatpush1.bf16.msra.mxu1 %v648_v59  ;;  %619 = vmatprep.subr.bf16.mxu0 %v618_v60 }
  0x66   :  { %651 = vmatprep.subr.bf16.mxu1 %v650_v63 }
  0x68   :  { %621 = vmatpush1.bf16.msra.mxu0 %v620_v3 }
  0x69   :  { %653 = vmatpush1.bf16.msra.mxu1 %v652_v4 }
  0x6b   :  { %374 = vmatmul.mubr.f32.vlgmr.msra.gmra.mrb[2].mxu0 %v788_v48 }
  0x6c   :  { %445 = vmatmul.mubr.f32.vlgmr.msra.gmra.mrb[2].mxu1 %v788_v48 }
 0x11e   :  { %v233_v10 = vpop.f32.mrb[0].mxu0 }
 0x11f   :  { %v304_v12 = vpop.f32.mrb[0].mxu1  ;;  %v235_v13 = vpop.f32.mrb[1].mxu0 }
 0x120   :  { %v459_v14 = vcombine.low %v233_v10, %v235_v13  ;;  %v306_v15 = vpop.f32.mrb[1].mxu1 }
 0x121   :  { %v460_v16 = vcombine.low %v304_v12, %v306_v15 }
 0x122   :  { %v469_v17 = vrot.slane %v459_v14, %v468_v11 }
 0x123   :  { %v476_v18 = vrot.slane %v460_v16, %v468_v11 }
 0x125   :  { %v491_v19 = vcombine.low %v469_v17, %v476_v18 }
 0x127   :  { %v499_v27 = vrot.slane %v491_v19, %v468_v11 }
 0x13e   :  { %v375_v20 = vpop.f32.mrb[2].mxu0 }
 0x13f   :  { %v446_v21 = vpop.f32.mrb[2].mxu1  ;;  %v377_v22 = vpop.f32.mrb[3].mxu0 }
 0x140   :  { %v461_v0 = vcombine.low %v375_v20, %v377_v22  ;;  %v448_v48 = vpop.f32.mrb[3].mxu1 }
 0x141   :  { %v462_v23 = vcombine.low %v446_v21, %v448_v48 }
 0x142   :  { %v483_v24 = vrot.slane %v461_v0, %v468_v11 }
 0x143   :  { %v490_v25 = vrot.slane %v462_v23, %v468_v11 }
 0x145   :  { %v492_v26 = vcombine.low %v483_v24, %v490_v25 }
 0x147   :  { %v506_v28 = vrot.slane %v492_v26, %v468_v11 }
 0x149   :  { %v507_v29 = vcombine.low %v499_v27, %v506_v28 }
 0x14b   :  { %509 = vst [vmem:[#allocation7] sm:$0xff] %v507_v29 }
 0x14c   :  { %716 = shalt.err (!%p713_p6)
}
 0x14d   :  { %s717_s11 = scalar_lea.hbm %s810_s2, 128 }
 0x14e   :  { %p718_p7 = scmp.ne.s32.totalorder %s810_s2, %s717_s11  ;;  %p721_p8 = scmp.lt.u32.totalorder %s717_s11, %s810_s2 }
 0x150   :  { %p723_p9 = pnand %p721_p8, %p718_p7 }
 0x152   :  { %726 = shalt.err (!%p723_p9)
}
 0x153   :  { %519 = dma.vmem_to_hbm [thread:$0]  %s517_s7, 128, %s810_s2, [#allocation4]  }
 0x154   :  { %731 = dma.done.wait [#allocation4], 128  }
 0x155   :  { %732 = vsyncadd [#allocation4], 4294967168 }
 0x156   :  { %523 = vsyncpa [#allocation3], 1 }
 0x157   :  { %524 = vsyncpa [#allocation6], 1 }
 0x158   :  { %525 = vsyncpa [#allocation4], 1 }

</bundles_post_ra>
